<compile_context>
chip_gen: v7x
topology: tpu7x:2x2x1
jax: 0.10.0
libtpu: 0.0.40
codegen_flags: <defaults>
</compile_context>

<pallas_src>
import functools

import jax
import jax.numpy as jnp
from jax.experimental import pallas as pl
from jax.experimental.pallas import tpu as pltpu


def _ln_kernel(x_ref, w_ref, b_ref, o_ref):
    """x_ref: (1, C, T) channel-major tile; w_ref/b_ref: (C, 1); o_ref: (1, T, C)."""
    x = x_ref[0].astype(jnp.float32)                   # (C, T), spatial on lanes
    # LayerNorm over channels (== last axis of the logical (B, HW, C) tensor).
    mu = jnp.mean(x, axis=0, keepdims=True)            # (1, T)
    d = x - mu
    var = jnp.mean(d * d, axis=0, keepdims=True)       # unbiased=False
    inv = jax.lax.rsqrt(var + 1e-5)
    y = d * inv * w_ref[...].astype(jnp.float32) + b_ref[...].astype(jnp.float32)
    # Single in-kernel transpose (XLU) so the HBM output is written directly in
    # (B, HW, C) layout — no wrapper-side transpose pass over the tensor.
    o_ref[0] = jnp.transpose(y, (1, 0)).astype(o_ref.dtype)   # (T, C)


def _pick_lane_tile(hw, c, in_bytes, out_bytes, *, max_tile=2048,
                    vmem_budget_bytes=10 * 1024 * 1024):
    """Largest 128-multiple lane tile whose double-buffered tiles fit the budget."""
    if hw <= 128:
        return hw                      # block equals the full dim: always legal
    # Live bytes per lane column: 2x-buffered input + 2x-buffered output tile
    # plus ~4 f32 temporaries inside the kernel body.
    per_col = c * (2 * in_bytes + 2 * out_bytes + 4 * 4)
    t = vmem_budget_bytes // max(per_col, 1)
    t = max(128, min(max_tile, t))
    t = (t // 128) * 128
    return min(t, (hw // 128) * 128)


@functools.partial(jax.jit, static_argnames=("max_lane_tile",))
def withbias_layernorm(x_nchw, weight, bias, *, max_lane_tile=2048):
    """WithBias_LayerNorm over channels of an NCHW feature map.

    x_nchw: (B, C, H, W); weight/bias: (C,).  Returns (B, H*W, C) in x's dtype,
    matching `WithBias_LayerNorm(to_3d(x))` in the PyTorch model.
    """
    B, C, H, W = x_nchw.shape
    HW = H * W
    x_bchw = x_nchw.reshape(B, C, HW)           # free reshape — no transpose pass

    itemsize = x_nchw.dtype.itemsize
    t = _pick_lane_tile(HW, C, itemsize, itemsize, max_tile=max_lane_tile)
    # Two parallel grid axes; B * ceil(HW/t) steps keep both v7x TensorCores
    # busy for real feature-map sizes.
    grid = (B, pl.cdiv(HW, t))

    w2d = weight.reshape(C, 1)
    b2d = bias.reshape(C, 1)

    out = pl.pallas_call(
        _ln_kernel,
        out_shape=jax.ShapeDtypeStruct((B, HW, C), x_nchw.dtype),
        grid_spec=pltpu.PrefetchScalarGridSpec(
            num_scalar_prefetch=0,
            grid=grid,
            in_specs=[
                pl.BlockSpec((1, C, t), lambda b, j: (b, 0, j)),  # NCHW read, lane-dense
                pl.BlockSpec((C, 1), lambda b, j: (0, 0)),        # weight (broadcast)
                pl.BlockSpec((C, 1), lambda b, j: (0, 0)),        # bias   (broadcast)
            ],
            out_specs=pl.BlockSpec((1, t, C), lambda b, j: (b, j, 0)),
        ),
        compiler_params=pltpu.CompilerParams(
            dimension_semantics=("parallel", "parallel"),
            vmem_limit_bytes=32 * 1024 * 1024,   # above v5e's 16 MiB scoped default
        ),
    )(x_bchw, w2d, b2d)
    return out


def _reference(x_nchw, weight, bias):
    B, C, H, W = x_nchw.shape
    x = jnp.transpose(x_nchw, (0, 2, 3, 1)).reshape(B, H * W, C).astype(jnp.float32)
    mu = jnp.mean(x, axis=-1, keepdims=True)
    var = jnp.mean((x - mu) ** 2, axis=-1, keepdims=True)
    return (x - mu) / jnp.sqrt(var + 1e-5) * weight.astype(jnp.float32) \
        + bias.astype(jnp.float32)


if __name__ == "__main__":
    key = jax.random.PRNGKey(0)
    kx, kw, kb = jax.random.split(key, 3)
    B, C, H, W = 2, 4, 16, 16
    x = jax.random.normal(kx, (B, C, H, W), dtype=jnp.float32)

    # 1) Parameters exactly as the module's __init__ (weight=ones, bias=zeros).
    w_init = jnp.ones((C,), dtype=jnp.float32)
    b_init = jnp.zeros((C,), dtype=jnp.float32)
    out = jax.block_until_ready(withbias_layernorm(x, w_init, b_init))
    ref = _reference(x, w_init, b_init)
    assert out.shape == (B, H * W, C)
    assert jnp.allclose(out, ref, atol=1e-5, rtol=1e-5), "mismatch vs reference (init params)"

    # 2) Non-trivial (still deterministic) affine params to exercise weight/bias.
    w_rnd = 1.0 + 0.1 * jax.random.normal(kw, (C,), dtype=jnp.float32)
    b_rnd = 0.1 * jax.random.normal(kb, (C,), dtype=jnp.float32)
    out2 = jax.block_until_ready(withbias_layernorm(x, w_rnd, b_rnd))
    ref2 = _reference(x, w_rnd, b_rnd)
    assert jnp.allclose(out2, ref2, atol=1e-5, rtol=1e-5), "mismatch vs reference (affine params)"

    print("KERNEL_OK")
</pallas_src>

<mosaic_0001>
module attributes {stable_mosaic.version = 11 : i64} {
  func.func @_ln_kernel(%arg0: i32, %arg1: i32, %arg2: memref<1x4x256xf32, #tpu.memory_space<vmem>>, %arg3: memref<4x1xf32, #tpu.memory_space<vmem>>, %arg4: memref<4x1xf32, #tpu.memory_space<vmem>>, %arg5: memref<1x256x4xf32, #tpu.memory_space<vmem>>) attributes {dimension_semantics = [#tpu.dimension_semantics<parallel>, #tpu.dimension_semantics<parallel>], iteration_bounds = array<i64: 2, 1>, scalar_prefetch = 0 : i64, scratch_operands = 0 : i64, tpu.core_type = #tpu.core_type<tc>, window_params = [{transform_indices = @transform_0, window_bounds = array<i64: 1, 4, 256>}, {pipeline_mode = #tpu.pipeline_mode<synchronous>, transform_indices = @transform_1, window_bounds = array<i64: 4, 1>}, {pipeline_mode = #tpu.pipeline_mode<synchronous>, transform_indices = @transform_2, window_bounds = array<i64: 4, 1>}, {transform_indices = @transform_3, window_bounds = array<i64: 1, 256, 4>}]} {
    %c0 = arith.constant 0 : index
    %c0_0 = arith.constant 0 : index
    %c0_1 = arith.constant 0 : index
    %0 = vector.load %arg2[%c0, %c0_0, %c0_1] : memref<1x4x256xf32, #tpu.memory_space<vmem>>, vector<1x4x256xf32>
    %1 = vector.shape_cast %0 : vector<1x4x256xf32> to vector<4x256xf32>
    %cst = arith.constant dense<0.000000e+00> : vector<256xf32>
    %2 = vector.multi_reduction <add>, %1, %cst [0] : vector<4x256xf32> to vector<256xf32>
    %3 = vector.shape_cast %2 : vector<256xf32> to vector<1x256xf32>
    %cst_2 = arith.constant 4.000000e+00 : f32
    %4 = vector.broadcast %cst_2 : f32 to vector<1x256xf32>
    %5 = arith.divf %3, %4 : vector<1x256xf32>
    %6 = vector.broadcast %5 : vector<1x256xf32> to vector<4x256xf32>
    %7 = arith.subf %1, %6 : vector<4x256xf32>
    %8 = arith.mulf %7, %7 : vector<4x256xf32>
    %cst_3 = arith.constant dense<0.000000e+00> : vector<256xf32>
    %9 = vector.multi_reduction <add>, %8, %cst_3 [0] : vector<4x256xf32> to vector<256xf32>
    %10 = vector.shape_cast %9 : vector<256xf32> to vector<1x256xf32>
    %cst_4 = arith.constant 4.000000e+00 : f32
    %11 = vector.broadcast %cst_4 : f32 to vector<1x256xf32>
    %12 = arith.divf %10, %11 : vector<1x256xf32>
    %cst_5 = arith.constant 9.99999974E-6 : f32
    %13 = vector.broadcast %cst_5 : f32 to vector<1x256xf32>
    %14 = arith.addf %12, %13 : vector<1x256xf32>
    %15 = math.rsqrt %14 : vector<1x256xf32>
    %16 = vector.broadcast %15 : vector<1x256xf32> to vector<4x256xf32>
    %17 = arith.mulf %7, %16 : vector<4x256xf32>
    %c0_6 = arith.constant 0 : index
    %c0_7 = arith.constant 0 : index
    %18 = vector.load %arg3[%c0_6, %c0_7] : memref<4x1xf32, #tpu.memory_space<vmem>>, vector<4x1xf32>
    %19 = vector.broadcast %18 : vector<4x1xf32> to vector<4x256xf32>
    %20 = arith.mulf %17, %19 : vector<4x256xf32>
    %c0_8 = arith.constant 0 : index
    %c0_9 = arith.constant 0 : index
    %21 = vector.load %arg4[%c0_8, %c0_9] : memref<4x1xf32, #tpu.memory_space<vmem>>, vector<4x1xf32>
    %22 = vector.broadcast %21 : vector<4x1xf32> to vector<4x256xf32>
    %23 = arith.addf %20, %22 : vector<4x256xf32>
    %24 = tpu.transpose %23, [1, 0] : vector<4x256xf32> -> vector<256x4xf32>
    %c0_10 = arith.constant 0 : index
    %c0_11 = arith.constant 0 : index
    %c0_12 = arith.constant 0 : index
    %25 = vector.load %arg5[%c0_10, %c0_11, %c0_12] : memref<1x256x4xf32, #tpu.memory_space<vmem>>, vector<1x256x4xf32>
    %26 = vector.shape_cast %25 : vector<1x256x4xf32> to vector<256x4xf32>
    %27 = vector.shape_cast %24 : vector<256x4xf32> to vector<1x256x4xf32>
    tpu.vector_store %arg5[%c0_10, %c0_11, %c0_12], %27 {strides = array<i32>} : memref<1x256x4xf32, #tpu.memory_space<vmem>>, vector<1x256x4xf32>,
    return
  }
  func.func @transform_0(%arg0: i32, %arg1: i32) -> (i32, i32, i32) {
    %c0_i32 = arith.constant 0 : i32
    %c0_i32_0 = arith.constant 0 : i32
    return %arg0, %c0_i32, %arg1 : i32, i32, i32
  }
  func.func @transform_1(%arg0: i32, %arg1: i32) -> (i32, i32) {
    %c0_i32 = arith.constant 0 : i32
    %c0_i32_0 = arith.constant 0 : i32
    %c0_i32_1 = arith.constant 0 : i32
    return %c0_i32, %c0_i32_0 : i32, i32
  }
  func.func @transform_2(%arg0: i32, %arg1: i32) -> (i32, i32) {
    %c0_i32 = arith.constant 0 : i32
    %c0_i32_0 = arith.constant 0 : i32
    %c0_i32_1 = arith.constant 0 : i32
    return %c0_i32, %c0_i32_0 : i32, i32
  }
  func.func @transform_3(%arg0: i32, %arg1: i32) -> (i32, i32, i32) {
    %c0_i32 = arith.constant 0 : i32
    %c0_i32_0 = arith.constant 0 : i32
    return %arg0, %arg1, %c0_i32 : i32, i32, i32
  }
}

</mosaic_0001>

<bundles_post_ra>
// kernel: withbias_layernorm.1
= control target key start
LH: loop header
LB: loop body
LE: loop exit
PB: predicated region body
PF: predicated region fallthrough
CT: control target
= control target key end

     0   :  { %s573_s12 = smov 0   ;;  %s575_s13 = smov 0   ;;  %s686_s0 = inlined_call_operand.vmem [shape: f32[2,4,256], index: 0, kind: input, shape index: {}]   ;;  %s687_s1 = inlined_call_operand.vmem [shape: f32[4,1], index: 1, kind: input, shape index: {}]   ;;  %s688_s2 = inlined_call_operand.vmem [shape: f32[4,1], index: 2, kind: input, shape index: {}]   ;;  %s689_s3 = inlined_call_operand.vmem [shape: f32[2,256,4], index: 3, kind: output, shape index: {}]  }
   0x1   :  { %s577_s14 = smov 0  }
   0x2 LB: > { %s25_s15 = sadd.s32 1, %s545_s13  ;;  %p485_p0 = scmp.ge.s32.totalorder %s549_s14, 1  ;;  %s549_s14 = sphi %s577_s14, %s13_s14   ;;  %s545_s13 = sphi %s575_s13, %s691_s13   ;;  %s541_s12 = sphi %s573_s12, %s690_s12  }
   0x3   : > { %p27_p1 = scmp.ge.s32.totalorder %s25_s15, 2  ;;  %p158_p2 = scmp.lt.s32.totalorder %s549_s14, 3 }
   0x5   : > { %s693_s15 = smov (%p27_p1, %s25_s15), 0  ;;  %p159_p3 = pnand %p485_p0, %p158_p2 }
   0x6   : > { %v266_v0 = vld [vmem:[%s687_s1] sm:$0xf] (!%p159_p3)  ;;  %v551_v1 = vmov (!%p159_p3), 0   ;;  %p191_p4 = scmp.lt.s32.totalorder (!%p159_p3), %s541_s12, 1  ;;  %vm214_vm0 = vcmask (!%p159_p3), 1043456   ;;  %v274_v45 = vlaneseq (!%p159_p3)  ;;  %vm361_vm1 = vcmask (!%p159_p3), 31744  }
   0x7   : > { %162 = sbr.rel (%p159_p3) target bundleno = 398 (0x18e), region = 32  ;;  %521 = vset.pattern.permute.xlu0 (!%p159_p3), %v551_v1  ;;  %v280_v2 = vld [vmem:[%s688_s2] sm:$0xf] (!%p159_p3)  ;;  %v552_v43 = vmov (!%p159_p3), 839922192  }
   0x8   : > { %269 = vperm.xlu0 (!%p159_p3), %521, %v266_v0   ;;  %v272_v44 = vunpack.c.l.s4 (!%p159_p3), %v552_v43  ;;  %v275_v48 = vshrl.u32 (!%p159_p3), %v274_v45, 7 }
   0xa   : > { %v273_v47 = vunpack.c.0.s8 (!%p159_p3), %v272_v44 }
   0xc   : > { %283 = vperm.xlu0 (!%p159_p3), %521, %v280_v2   ;;  %v276_v50 = vsub.s32 (!%p159_p3), %v273_v47, %v275_v48 }
   0xe   : > { %s695_s12 = smov (!%p191_p4, %s541_s12), 1 }
   0xf   : > { %s492_s20 = sshll.u32 %s695_s12, 3  ;;  %s493_s24 = sshll.u32 %s695_s12, 8 }
  0x10   : > { %s198_s23 = scalar_lea.vmem %s686_s0, %s492_s20  ;;  %s611_s27 = scalar_lea.vmem %s689_s3, %s493_s24 }
  0x11   : > { %v210_v3 = vld [vmem:[%s198_s23] sm:$0xff] }
  0x12   : > { %v212_v4 = vcombine.high %v210_v3, %v210_v3  ;;  %v215_v5 = vsel %vm214_vm0, %v210_v3, 0.0 }
  0x13   : > { %v216_v7 = vrot.slane %v215_v5, 4 }
  0x14   : > { %v222_v6 = vsel %vm214_vm0, %v212_v4, 0.0 }
  0x15   : > { %v223_v8 = vrot.slane %v222_v6, 4  ;;  %v217_v9 = vadd.f32 %v216_v7, %v215_v5 }
  0x17   : > { %v224_v10 = vadd.f32 %v223_v8, %v222_v6  ;;  %v218_v11 = vrot.slane %v217_v9, 2 }
  0x19   : > { %v225_v12 = vrot.slane %v224_v10, 2  ;;  %v219_v13 = vadd.f32 %v218_v11, %v217_v9 }
  0x1b   : > { %v226_v14 = vadd.f32 %v225_v12, %v224_v10  ;;  %v220_v15 = vrot.slane %v219_v13, 1 }
  0x1d   : > { %v227_v16 = vrot.slane %v226_v14, 1  ;;  %v221_v17 = vadd.f32 %v220_v15, %v219_v13 }
  0x1f   : > { %v228_v18 = vadd.f32 %v227_v16, %v226_v14  ;;  %v230_v19 = vmul.f32 0.25, %v221_v17 }
  0x21   : > { %v231_v20 = vmul.f32 0.25, %v228_v18 }
  0x23   : > { %v234_v21 = vcombine.low %v230_v19, %v231_v20 }
  0x25   : > { %v236_v22 = vsub.f32 %v210_v3, %v234_v21 }
  0x27   : > { %v237_v23 = vmul.f32 %v236_v22, %v236_v22 }
  0x29   : > { %v239_v24 = vcombine.high %v237_v23, %v237_v23  ;;  %v241_v25 = vsel %vm214_vm0, %v237_v23, 0.0 }
  0x2a   : > { %v242_v27 = vrot.slane %v241_v25, 4 }
  0x2b   : > { %v248_v26 = vsel %vm214_vm0, %v239_v24, 0.0 }
  0x2c   : > { %v249_v28 = vrot.slane %v248_v26, 4  ;;  %v243_v29 = vadd.f32 %v242_v27, %v241_v25 }
  0x2e   : > { %v250_v30 = vadd.f32 %v249_v28, %v248_v26  ;;  %v244_v31 = vrot.slane %v243_v29, 2 }
  0x30   : > { %v251_v32 = vrot.slane %v250_v30, 2  ;;  %v245_v33 = vadd.f32 %v244_v31, %v243_v29 }
  0x32   : > { %v252_v34 = vadd.f32 %v251_v32, %v250_v30  ;;  %v246_v35 = vrot.slane %v245_v33, 1 }
  0x34   : > { %v253_v36 = vrot.slane %v252_v34, 1  ;;  %v247_v37 = vadd.f32 %v246_v35, %v245_v33 }
  0x36   : > { %v254_v38 = vadd.f32 %v253_v36, %v252_v34  ;;  %v255_v39 = vmul.f32 0.25, %v247_v37 }
  0x38   : > { %v256_v40 = vmul.f32 0.25, %v254_v38  ;;  %v257_v41 = vadd.f32 1e-05, %v255_v39 }
  0x3a   : > { %v258_v42 = vadd.f32 1e-05, %v256_v40  ;;  %523 = vrsqrt.f32 %v257_v41 }
  0x3c   : > { %525 = vrsqrt.f32 %v258_v42 }
  0x44   : > { %v524_v46 = vpop.eup %523 }
  0x46   : > { %v526_v49 = vpop.eup %525 }
  0x47   : > { %v263_v51 = vcombine.low %v524_v46, %v526_v49 }
  0x49   : > { %v265_v53 = vmul.f32 %v263_v51, %v236_v22 }
  0x87   : > { %v270_v52 = vpop.permute.xlu0 %269 }
  0x88   : > { %v277_v54 = vrot.slane %v270_v52, %v276_v50 }
  0x8a   : > { %v279_v56 = vmul.f32 %v277_v54, %v265_v53 }
  0x8b   : > { %v284_v55 = vpop.permute.xlu0 %283 }
  0x8c   : > { %v291_v57 = vrot.slane %v284_v55, %v276_v50 }
  0x8e   : > { %v293_v58 = vadd.f32 %v291_v57, %v279_v56 }
  0x90   : > { %297 = vxpose.xlu1.b32.start.end [1/1] (short) %v293_v58, 128  ;;  %v295_v59 = vcombine.high %v293_v58, %v293_v58 }
  0xcd   : > { %329 = vxpose.xlu1.b32.start.end [1/1] (short) %v295_v59, 128 }
 0x110   : > { %v313_v60 = vpop.trf.xlu1 }
 0x111   : > { %362 = vst.msk [vmem:[%s611_s27] sm:$0xff] %vm361_vm1, %v313_v60 }
 0x114   : > { %v314_v61 = vpop.trf.xlu1 }
 0x115   : > { %363 = vst.msk [vmem:[%s611_s27 + $0x8] sm:$0xff] %vm361_vm1, %v314_v61 }
 0x118   : > { %v315_v62 = vpop.trf.xlu1 }
 0x119   : > { %364 = vst.msk [vmem:[%s611_s27 + $0x10] sm:$0xff] %vm361_vm1, %v315_v62 }
 0x11c   : > { %v316_v63 = vpop.trf.xlu1 }
 0x11d   : > { %365 = vst.msk [vmem:[%s611_s27 + $0x18] sm:$0xff] %vm361_vm1, %v316_v63 }
 0x120   : > { %v317_v0 = vpop.trf.xlu1 }
 0x121   : > { %366 = vst.msk [vmem:[%s611_s27 + $0x20] sm:$0xff] %vm361_vm1, %v317_v0 }
 0x124   : > { %v318_v1 = vpop.trf.xlu1 }
 0x125   : > { %367 = vst.msk [vmem:[%s611_s27 + $0x28] sm:$0xff] %vm361_vm1, %v318_v1 }
 0x128   : > { %v319_v2 = vpop.trf.xlu1 }
 0x129   : > { %368 = vst.msk [vmem:[%s611_s27 + $0x30] sm:$0xff] %vm361_vm1, %v319_v2 }
 0x12c   : > { %v320_v3 = vpop.trf.xlu1 }
 0x12d   : > { %369 = vst.msk [vmem:[%s611_s27 + $0x38] sm:$0xff] %vm361_vm1, %v320_v3 }
 0x130   : > { %v321_v4 = vpop.trf.xlu1 }
 0x131   : > { %370 = vst.msk [vmem:[%s611_s27 + $0x40] sm:$0xff] %vm361_vm1, %v321_v4 }
 0x134   : > { %v322_v5 = vpop.trf.xlu1 }
 0x135   : > { %371 = vst.msk [vmem:[%s611_s27 + $0x48] sm:$0xff] %vm361_vm1, %v322_v5 }
 0x138   : > { %v323_v6 = vpop.trf.xlu1 }
 0x139   : > { %372 = vst.msk [vmem:[%s611_s27 + $0x50] sm:$0xff] %vm361_vm1, %v323_v6 }
 0x13c   : > { %v324_v7 = vpop.trf.xlu1 }
 0x13d   : > { %373 = vst.msk [vmem:[%s611_s27 + $0x58] sm:$0xff] %vm361_vm1, %v324_v7 }
 0x140   : > { %v325_v8 = vpop.trf.xlu1 }
 0x141   : > { %374 = vst.msk [vmem:[%s611_s27 + $0x60] sm:$0xff] %vm361_vm1, %v325_v8 }
 0x144   : > { %v326_v9 = vpop.trf.xlu1 }
 0x145   : > { %375 = vst.msk [vmem:[%s611_s27 + $0x68] sm:$0xff] %vm361_vm1, %v326_v9 }
 0x148   : > { %v327_v10 = vpop.trf.xlu1 }
 0x149   : > { %376 = vst.msk [vmem:[%s611_s27 + $0x70] sm:$0xff] %vm361_vm1, %v327_v10 }
 0x14c   : > { %v328_v11 = vpop.trf.xlu1 }
 0x14d   : > { %377 = vst.msk [vmem:[%s611_s27 + $0x78] sm:$0xff] %vm361_vm1, %v328_v11 }
 0x150   : > { %v345_v12 = vpop.trf.xlu1 }
 0x151   : > { %378 = vst.msk [vmem:[%s611_s27 + $0x80] sm:$0xff] %vm361_vm1, %v345_v12 }
 0x154   : > { %v346_v13 = vpop.trf.xlu1 }
 0x155   : > { %379 = vst.msk [vmem:[%s611_s27 + $0x88] sm:$0xff] %vm361_vm1, %v346_v13 }
 0x158   : > { %v347_v14 = vpop.trf.xlu1 }
 0x159   : > { %380 = vst.msk [vmem:[%s611_s27 + $0x90] sm:$0xff] %vm361_vm1, %v347_v14 }
 0x15c   : > { %v348_v15 = vpop.trf.xlu1 }
 0x15d   : > { %381 = vst.msk [vmem:[%s611_s27 + $0x98] sm:$0xff] %vm361_vm1, %v348_v15 }
 0x160   : > { %v349_v16 = vpop.trf.xlu1 }
 0x161   : > { %382 = vst.msk [vmem:[%s611_s27 + $0xa0] sm:$0xff] %vm361_vm1, %v349_v16 }
 0x164   : > { %v350_v17 = vpop.trf.xlu1 }
 0x165   : > { %383 = vst.msk [vmem:[%s611_s27 + $0xa8] sm:$0xff] %vm361_vm1, %v350_v17 }
 0x168   : > { %v351_v18 = vpop.trf.xlu1 }
 0x169   : > { %384 = vst.msk [vmem:[%s611_s27 + $0xb0] sm:$0xff] %vm361_vm1, %v351_v18 }
 0x16c   : > { %v352_v19 = vpop.trf.xlu1 }
 0x16d   : > { %385 = vst.msk [vmem:[%s611_s27 + $0xb8] sm:$0xff] %vm361_vm1, %v352_v19 }
 0x170   : > { %v353_v20 = vpop.trf.xlu1 }
 0x171   : > { %386 = vst.msk [vmem:[%s611_s27 + $0xc0] sm:$0xff] %vm361_vm1, %v353_v20 }
 0x174   : > { %v354_v21 = vpop.trf.xlu1 }
 0x175   : > { %387 = vst.msk [vmem:[%s611_s27 + $0xc8] sm:$0xff] %vm361_vm1, %v354_v21 }
 0x178   : > { %v355_v22 = vpop.trf.xlu1 }
 0x179   : > { %388 = vst.msk [vmem:[%s611_s27 + $0xd0] sm:$0xff] %vm361_vm1, %v355_v22 }
 0x17c   : > { %v356_v23 = vpop.trf.xlu1 }
 0x17d   : > { %389 = vst.msk [vmem:[%s611_s27 + $0xd8] sm:$0xff] %vm361_vm1, %v356_v23 }
 0x180   : > { %v357_v24 = vpop.trf.xlu1 }
 0x181   : > { %390 = vst.msk [vmem:[%s611_s27 + $0xe0] sm:$0xff] %vm361_vm1, %v357_v24 }
 0x184   : > { %v358_v25 = vpop.trf.xlu1 }
 0x185   : > { %391 = vst.msk [vmem:[%s611_s27 + $0xe8] sm:$0xff] %vm361_vm1, %v358_v25 }
 0x188   : > { %v359_v26 = vpop.trf.xlu1 }
 0x189   : > { %392 = vst.msk [vmem:[%s611_s27 + $0xf0] sm:$0xff] %vm361_vm1, %v359_v26 }
 0x18c   : > { %v360_v27 = vpop.trf.xlu1 }
 0x18d   : > { %393 = vst.msk [vmem:[%s611_s27 + $0xf8] sm:$0xff] %vm361_vm1, %v360_v27 }
 0x18e PF: > { %s13_s14 = sadd.s32 1, %s549_s14   ;;  %s690_s12 = smov %s545_s13 }
 0x18f   : > { %p10_p5 = scmp.ge.s32.totalorder %s13_s14, 4   ;;  %s691_s13 = smov %s693_s15 }
 0x191   :  { %12 = sbr.rel (!%p10_p5) target bundleno = 2 (0x2), region = 62 }

</bundles_post_ra>
